<compile_context>
chip_gen: v7x
topology: tpu7x:2x2x1
jax: 0.10.0
libtpu: 0.0.40
codegen_flags: <defaults>
</compile_context>

<pallas_src>
import functools

import jax
import jax.numpy as jnp
from jax.experimental import pallas as pl
from jax.experimental.pallas import tpu as pltpu


def _round_up(x, m):
    return ((x + m - 1) // m) * m


def _conv_bn_act_kernel(p_ref, w_ref, bias_ref, o_ref, acc_ref, *, has_act):
    """Grid = (M tiles [parallel], K tiles [arbitrary]). BN scale is folded into
    w_ref in the wrapper, so the epilogue is add-bias (+ ReLU) only."""
    k = pl.program_id(1)

    @pl.when(k == 0)
    def _():
        acc_ref[...] = jnp.zeros_like(acc_ref)

    acc_ref[...] += jnp.dot(p_ref[...], w_ref[...],
                            preferred_element_type=jnp.float32)

    @pl.when(k == pl.num_programs(1) - 1)
    def _():
        y = acc_ref[...] + bias_ref[...]
        if has_act:
            y = jnp.maximum(y, 0.0)
        o_ref[...] = y.astype(o_ref.dtype)


def _im2col_nchw(x_nchw, kh, kw, stride, padding, dilation, out_dtype):
    """Plain-JAX glue: extract conv patches in the compute dtype.
    Row order (N, OH, OW); column order (C_in-major, tap = i*kw + j)."""
    n, c, h, w = x_nchw.shape
    x = jnp.transpose(x_nchw, (0, 2, 3, 1)).astype(out_dtype)  # NHWC, compute dtype
    x = jnp.pad(x, ((0, 0), (padding, padding), (padding, padding), (0, 0)))
    oh = (h + 2 * padding - dilation * (kh - 1) - 1) // stride + 1
    ow = (w + 2 * padding - dilation * (kw - 1) - 1) // stride + 1
    taps = []
    for i in range(kh):
        for j in range(kw):
            sl = x[:,
                   i * dilation:i * dilation + (oh - 1) * stride + 1:stride,
                   j * dilation:j * dilation + (ow - 1) * stride + 1:stride,
                   :]  # (N, OH, OW, C)
            taps.append(sl)
    # (N, OH, OW, C, KH*KW) -> (N*OH*OW, C*KH*KW), C-major / tap-minor
    patches = jnp.stack(taps, axis=-1).reshape(n, oh, ow, c * kh * kw)
    return patches.reshape(n * oh * ow, c * kh * kw), oh, ow


def conv_bn_act_block(x_nchw, params, *, stride, padding, dilation=1, groups=1,
                      has_bn=True, has_act=True, tm=512, tk=512,
                      compute_dtype=jnp.bfloat16):
    """Forward pass of ConvBnActBlock. x_nchw: (N, C_in, H, W) float32; returns float32 NCHW."""
    assert groups == 1, "groups > 1 not supported"
    w_oihw = params["conv_weight"]                      # (C_out, C_in, KH, KW)
    c_out, c_in, kh, kw = w_oihw.shape
    n = x_nchw.shape[0]

    patches, oh, ow = _im2col_nchw(x_nchw, kh, kw, stride, padding, dilation,
                                   compute_dtype)
    m, k = patches.shape

    # Fold BatchNorm (eval mode, running stats) into per-channel scale/bias; the
    # scale is then folded into the weight matrix (mathematically identical).
    if has_bn:
        eps = 1e-5
        inv_std = 1.0 / jnp.sqrt(params["bn_running_var"].astype(jnp.float32) + eps)
        scale = params["bn_weight"].astype(jnp.float32) * inv_std          # (C_out,)
        bias = (params["bn_bias"].astype(jnp.float32)
                - params["bn_running_mean"].astype(jnp.float32) * scale)   # (C_out,)
    else:
        scale = jnp.ones((c_out,), jnp.float32)
        bias = params["conv_bias"].astype(jnp.float32)

    w_mat = jnp.transpose(w_oihw.reshape(c_out, c_in * kh * kw)).astype(jnp.float32)
    w_mat = (w_mat * scale[None, :]).astype(compute_dtype)                  # (K, C_out)

    # Tile selection:
    #  - tm large to amortize per-step overhead / feed the MXU, but keep >= 2
    #    parallel grid steps when possible (v7x has 2 TensorCores).
    tm = max(128, min(_round_up(tm, 128), _round_up(m, 128)))
    while tm > 128 and -(-m // tm) < 2:
        tm = max(128, (tm // 2 // 128) * 128)
    m_pad = _round_up(m, tm)
    #  - tk a multiple of 128; pad K up to a multiple of tk so it divides evenly.
    tk = max(128, min(_round_up(tk, 128), _round_up(k, 128)))
    k_pad = _round_up(k, tk)
    #  - C_out padded to a multiple of 128 for lane-dense (unmasked) output stores.
    c_out_pad = _round_up(c_out, 128)

    # Single combined pad per operand (zeros contribute nothing to the matmul).
    if (m_pad, k_pad) != (m, k):
        patches = jnp.pad(patches, ((0, m_pad - m), (0, k_pad - k)))
    w_mat = jnp.pad(w_mat, ((0, k_pad - k), (0, c_out_pad - c_out)))
    bias2d = jnp.pad(bias, (0, c_out_pad - c_out)).reshape(1, c_out_pad)

    grid = (m_pad // tm, k_pad // tk)

    # VMEM budget: double-buffered streaming operands + resident f32 accumulator.
    elt = jnp.dtype(compute_dtype).itemsize
    vmem_needed = (2 * tm * tk * elt            # patches (double-buffered)
                   + 2 * tk * c_out_pad * elt   # weights (double-buffered)
                   + 2 * tm * c_out_pad * 4     # output  (double-buffered)
                   + tm * c_out_pad * 4         # f32 accumulator scratch
                   + 2 * c_out_pad * 4)         # bias
    vmem_limit = int(min(64 * 1024 * 1024,
                         max(32 * 1024 * 1024, vmem_needed * 3 // 2 + (4 << 20))))

    cost = pl.CostEstimate(
        flops=2 * m_pad * k_pad * c_out_pad,
        transcendentals=0,
        bytes_accessed=int(m_pad * k_pad * elt + k_pad * c_out_pad * elt
                           + c_out_pad * 4 + m_pad * c_out_pad * 4))

    kernel = functools.partial(_conv_bn_act_kernel, has_act=has_act)
    out_flat = pl.pallas_call(
        kernel,
        out_shape=jax.ShapeDtypeStruct((m_pad, c_out_pad), jnp.float32),
        grid_spec=pltpu.PrefetchScalarGridSpec(
            num_scalar_prefetch=0,
            grid=grid,
            in_specs=[
                pl.BlockSpec((tm, tk), lambda i, kk: (i, kk)),          # patches
                pl.BlockSpec((tk, c_out_pad), lambda i, kk: (kk, 0)),   # weights (BN-scaled)
                pl.BlockSpec((1, c_out_pad), lambda i, kk: (0, 0)),     # bias
            ],
            out_specs=pl.BlockSpec((tm, c_out_pad), lambda i, kk: (i, 0)),
            scratch_shapes=[pltpu.VMEM((tm, c_out_pad), jnp.float32)],
        ),
        compiler_params=pltpu.CompilerParams(
            dimension_semantics=("parallel", "arbitrary"),
            vmem_limit_bytes=vmem_limit),
        cost_estimate=cost,
    )(patches, w_mat, bias2d)

    out = out_flat[:m, :c_out].reshape(n, oh, ow, c_out)
    return jnp.transpose(out, (0, 3, 1, 2))  # back to NCHW


def _reference(x, params, *, stride, padding, dilation, has_bn, has_act):
    y = jax.lax.conv_general_dilated(
        x, params["conv_weight"],
        window_strides=(stride, stride),
        padding=[(padding, padding), (padding, padding)],
        rhs_dilation=(dilation, dilation),
        dimension_numbers=("NCHW", "OIHW", "NCHW"))
    if has_bn:
        eps = 1e-5
        mean = params["bn_running_mean"][None, :, None, None]
        var = params["bn_running_var"][None, :, None, None]
        gamma = params["bn_weight"][None, :, None, None]
        beta = params["bn_bias"][None, :, None, None]
        y = (y - mean) / jnp.sqrt(var + eps) * gamma + beta
    else:
        y = y + params["conv_bias"][None, :, None, None]
    if has_act:
        y = jnp.maximum(y, 0.0)
    return y


if __name__ == "__main__":
    # ConvBnActBlock(inplanes=4, planes=8, kernel_size=3, stride=1, padding=1)
    inplanes, planes, ksize, stride, padding, dilation = 4, 8, 3, 1, 1, 1

    key = jax.random.PRNGKey(0)
    kx, kw, kg, kb, km, kv, kcb = jax.random.split(key, 7)

    x = jax.random.normal(kx, (2, inplanes, 16, 16), jnp.float32)

    params = {
        "conv_weight": 0.1 * jax.random.normal(
            kw, (planes, inplanes, ksize, ksize), jnp.float32),
        "bn_weight": 1.0 + 0.1 * jax.random.normal(kg, (planes,), jnp.float32),
        "bn_bias": 0.1 * jax.random.normal(kb, (planes,), jnp.float32),
        "bn_running_mean": 0.05 * jax.random.normal(km, (planes,), jnp.float32),
        "bn_running_var": 1.0 + 0.1 * jax.random.uniform(kv, (planes,), jnp.float32),
    }

    ref = _reference(x, params, stride=stride, padding=padding,
                     dilation=dilation, has_bn=True, has_act=True)

    # 1) f32 compute path: tight correctness check.
    out_f32 = conv_bn_act_block(
        x, params, stride=stride, padding=padding, dilation=dilation,
        groups=1, has_bn=True, has_act=True, compute_dtype=jnp.float32)
    out_f32 = jax.block_until_ready(out_f32)
    assert out_f32.shape == ref.shape == (2, planes, 16, 16)
    assert jnp.allclose(out_f32, ref, atol=1e-4, rtol=1e-4), "f32 path mismatch"

    # 2) Default bf16 compute path (perf path): bf16-level tolerance vs f32 reference.
    out_bf16 = conv_bn_act_block(
        x, params, stride=stride, padding=padding, dilation=dilation,
        groups=1, has_bn=True, has_act=True)
    out_bf16 = jax.block_until_ready(out_bf16)
    assert jnp.allclose(out_bf16, ref, atol=5e-2, rtol=5e-2), "bf16 path mismatch"

    # 3) has_bn=False / has_act=False variant (conv bias path).
    params_nb = dict(params)
    params_nb["conv_bias"] = 0.1 * jax.random.normal(kcb, (planes,), jnp.float32)
    ref_nb = _reference(x, params_nb, stride=stride, padding=padding,
                        dilation=dilation, has_bn=False, has_act=False)
    out_nb = conv_bn_act_block(
        x, params_nb, stride=stride, padding=padding, dilation=dilation,
        groups=1, has_bn=False, has_act=False, compute_dtype=jnp.float32)
    out_nb = jax.block_until_ready(out_nb)
    assert jnp.allclose(out_nb, ref_nb, atol=1e-4, rtol=1e-4), "no-BN path mismatch"

    print("KERNEL_OK")
</pallas_src>

<mosaic_0001>
module attributes {stable_mosaic.version = 11 : i64} {
  func.func @_conv_bn_act_kernel(%arg0: i32, %arg1: i32, %arg2: memref<256x128xf32, #tpu.memory_space<vmem>>, %arg3: memref<128x128xf32, #tpu.memory_space<vmem>>, %arg4: memref<1x128xf32, #tpu.memory_space<vmem>>, %arg5: memref<256x128xf32, #tpu.memory_space<vmem>>, %arg6: memref<256x128xf32, #tpu.memory_space<vmem>>) attributes {dimension_semantics = [#tpu.dimension_semantics<parallel>, #tpu.dimension_semantics<arbitrary>], iteration_bounds = array<i64: 2, 1>, scalar_prefetch = 0 : i64, scratch_operands = 1 : i64, tpu.core_type = #tpu.core_type<tc>, window_params = [{transform_indices = @transform_0, window_bounds = array<i64: 256, 128>}, {transform_indices = @transform_1, window_bounds = array<i64: 128, 128>}, {pipeline_mode = #tpu.pipeline_mode<synchronous>, transform_indices = @transform_2, window_bounds = array<i64: 1, 128>}, {transform_indices = @transform_3, window_bounds = array<i64: 256, 128>}]} {
    %c0_i32 = arith.constant 0 : i32
    %0 = arith.cmpi eq, %arg1, %c0_i32 : i32
    %1 = arith.extui %0 : i1 to i32
    %c0_i32_0 = arith.constant 0 : i32
    %2 = arith.cmpi ne, %1, %c0_i32_0 : i32
    scf.if %2 {
      %cst_10 = arith.constant 0.000000e+00 : f32
      %12 = vector.broadcast %cst_10 : f32 to vector<256x128xf32>
      %c0_11 = arith.constant 0 : index
      %c0_12 = arith.constant 0 : index
      %13 = vector.load %arg6[%c0_11, %c0_12] : memref<256x128xf32, #tpu.memory_space<vmem>>, vector<256x128xf32>
      tpu.vector_store %arg6[%c0_11, %c0_12], %12 {strides = array<i32>} : memref<256x128xf32, #tpu.memory_space<vmem>>, vector<256x128xf32>,
    } else {
    }
    %c0 = arith.constant 0 : index
    %c0_1 = arith.constant 0 : index
    %3 = vector.load %arg6[%c0, %c0_1] : memref<256x128xf32, #tpu.memory_space<vmem>>, vector<256x128xf32>
    %c0_2 = arith.constant 0 : index
    %c0_3 = arith.constant 0 : index
    %4 = vector.load %arg2[%c0_2, %c0_3] : memref<256x128xf32, #tpu.memory_space<vmem>>, vector<256x128xf32>
    %c0_4 = arith.constant 0 : index
    %c0_5 = arith.constant 0 : index
    %5 = vector.load %arg3[%c0_4, %c0_5] : memref<128x128xf32, #tpu.memory_space<vmem>>, vector<128x128xf32>
    %cst = arith.constant dense<0.000000e+00> : vector<256x128xf32>
    %6 = tpu.matmul %4, %5, %cst {dimension_numbers = #tpu.dot_dimension_numbers<[1], [0], [0], [1], [0, 0, 1, 1], [], []>} : vector<256x128xf32>, vector<128x128xf32>, vector<256x128xf32> -> vector<256x128xf32>
    %7 = arith.addf %3, %6 : vector<256x128xf32>
    %c0_6 = arith.constant 0 : index
    %c0_7 = arith.constant 0 : index
    %8 = vector.load %arg6[%c0_6, %c0_7] : memref<256x128xf32, #tpu.memory_space<vmem>>, vector<256x128xf32>
    tpu.vector_store %arg6[%c0_6, %c0_7], %7 {strides = array<i32>} : memref<256x128xf32, #tpu.memory_space<vmem>>, vector<256x128xf32>,
    %c0_i32_8 = arith.constant 0 : i32
    %9 = arith.cmpi eq, %arg1, %c0_i32_8 : i32
    %10 = arith.extui %9 : i1 to i32
    %c0_i32_9 = arith.constant 0 : i32
    %11 = arith.cmpi ne, %10, %c0_i32_9 : i32
    scf.if %11 {
      %c0_10 = arith.constant 0 : index
      %c0_11 = arith.constant 0 : index
      %12 = vector.load %arg6[%c0_10, %c0_11] : memref<256x128xf32, #tpu.memory_space<vmem>>, vector<256x128xf32>
      %c0_12 = arith.constant 0 : index
      %c0_13 = arith.constant 0 : index
      %13 = vector.load %arg4[%c0_12, %c0_13] : memref<1x128xf32, #tpu.memory_space<vmem>>, vector<1x128xf32>
      %14 = vector.broadcast %13 : vector<1x128xf32> to vector<256x128xf32>
      %15 = arith.addf %12, %14 : vector<256x128xf32>
      %cst_14 = arith.constant 0.000000e+00 : f32
      %16 = vector.broadcast %cst_14 : f32 to vector<256x128xf32>
      %17 = arith.maximumf %15, %16 : vector<256x128xf32>
      %c0_15 = arith.constant 0 : index
      %c0_16 = arith.constant 0 : index
      %18 = vector.load %arg5[%c0_15, %c0_16] : memref<256x128xf32, #tpu.memory_space<vmem>>, vector<256x128xf32>
      tpu.vector_store %arg5[%c0_15, %c0_16], %17 {strides = array<i32>} : memref<256x128xf32, #tpu.memory_space<vmem>>, vector<256x128xf32>,
    } else {
    }
    return
  }
  func.func @transform_0(%arg0: i32, %arg1: i32) -> (i32, i32) {
    %c0_i32 = arith.constant 0 : i32
    return %arg0, %arg1 : i32, i32
  }
  func.func @transform_1(%arg0: i32, %arg1: i32) -> (i32, i32) {
    %c0_i32 = arith.constant 0 : i32
    %c0_i32_0 = arith.constant 0 : i32
    return %arg1, %c0_i32 : i32, i32
  }
  func.func @transform_2(%arg0: i32, %arg1: i32) -> (i32, i32) {
    %c0_i32 = arith.constant 0 : i32
    %c0_i32_0 = arith.constant 0 : i32
    %c0_i32_1 = arith.constant 0 : i32
    return %c0_i32, %c0_i32_0 : i32, i32
  }
  func.func @transform_3(%arg0: i32, %arg1: i32) -> (i32, i32) {
    %c0_i32 = arith.constant 0 : i32
    %c0_i32_0 = arith.constant 0 : i32
    return %arg0, %c0_i32 : i32, i32
  }
}

</mosaic_0001>

<bundles_post_ra>
// kernel: tpu_custom_call.1
= control target key start
LH: loop header
LB: loop body
LE: loop exit
PB: predicated region body
PF: predicated region fallthrough
CT: control target
= control target key end

     0   :  { %8 = vsyncpa [#allocation4], 0  ;;  %s1663_s0 = inlined_call_operand.hbm [shape: f32[512,128], index: 0, kind: input, shape index: {}]   ;;  %s1664_s1 = inlined_call_operand.hbm [shape: f32[128,128], index: 1, kind: input, shape index: {}]   ;;  %s1665_s2 = inlined_call_operand.vmem [shape: f32[1,128], index: 2, kind: input, shape index: {}]   ;;  %s1666_s3 = inlined_call_operand.hbm [shape: f32[512,128], index: 3, kind: output, shape index: {}]  }
   0x1   :  { %10 = vsyncpa [#allocation4 + $0x1], 0 }
   0x2   :  { %11 = vsyncpa [#allocation7], 0 }
   0x3   :  { %12 = vsyncpa [#allocation5], 0 }
   0x4   :  { %14 = vsyncpa [#allocation5 + $0x1], 0  ;;  %s1328_s12 = smov 0   ;;  %s1330_s13 = smov 0  }
   0x5   :  { %s1332_s14 = smov 0   ;;  %s1334_s15 = smov 0  }
   0x6   :  { %s1336_s16 = smov 0   ;;  %s1338_s17 = smov 0  }
   0x7 LB: > { %s882_s18 = sadd.s32 4294967295, %s1299_s17   ;;  %s883_s19 = sadd.s32 4294967294, %s1299_s17   ;;  %s1299_s17 = sphi %s1338_s17, %s20_s17   ;;  %s1295_s16 = sphi %s1336_s16, %s1690_s16   ;;  %s1291_s15 = sphi %s1334_s15, %s1689_s15   ;;  %s1287_s14 = sphi %s1332_s14, %s1688_s14   ;;  %s1283_s13 = sphi %s1330_s13, %s1687_s13   ;;  %s1279_s12 = sphi %s1328_s12, %s1686_s12  }
   0x8   : > { %p54_p0 = scmp.ne.s32.totalorder %s1283_s13, %s1279_s12  ;;  %p1362_p1 = scmp.eq.s32.totalorder %s882_s18, 0 }
   0x9   : > { %p1366_p2 = scmp.eq.s32.totalorder %s882_s18, 1  ;;  %p131_p3 = scmp.eq.s32.totalorder %s883_s19, 1 }
   0xa   : > { %s1671_s20 = scalar_select %p1362_p1, 1, 0 }
   0xb   : > { %s1672_s21 = scalar_select %p1366_p2, 1, 0 }
   0xc   : > { %p1372_p4 = por %p1362_p1, %p54_p0  ;;  %p884_p5 = scmp.ge.s32.totalorder %s1299_s17, 1 }
   0xd   : > { %p1377_p6 = por %p131_p3, %p54_p0  ;;  %p138_p7 = scmp.lt.s32.totalorder %s1299_s17, 3 }
   0xe   : > { %s1673_s22 = scalar_select %p1372_p4, 1, 0 }
   0xf   : > { %s1674_s23 = scalar_select %p1377_p6, 1, 0 }
  0x10   : > { %p1382_p8 = pnand %p884_p5, %p138_p7  ;;  %s1301_s25 = smov [#allocation6]  }
  0x11   : > { %s153_s26 = sshll.u32 %s1301_s25, 4  ;;  %s32_s28 = sadd.s32 1, %s1295_s16  ;;  %s154_s26 = int_to_ptr.vmem [resolvable:$true] %s153_s26 }
  0x12   : > { %s1675_s24 = scalar_select %p1382_p8, 1, 0 }
  0x13   : > { %p1086_p9 = pneg %p1382_p8  ;;  %s1155_s4 = scalar_lea.hbm %s1664_s1, 2048 }
  0x14   : > { %p1156_p12 = scmp.ne.s32.totalorder %s1664_s1, %s1155_s4  ;;  %p1162_p5 = scmp.lt.u32.totalorder %s1155_s4, %s1664_s1 }
  0x15   : > { %p1391_p11 = pnand %p1086_p9, %p1362_p1 }
  0x17   : > { %p1157_p13 = pneg %p1391_p11 }
  0x19   : > { %p1158_p0 = pnand %p1157_p13, %p1156_p12 }
  0x1b   : > { %p1159_p3 = pneg %p1158_p0 }
  0x1d   : > { %p1164_p7 = pnand %p1162_p5, %p1159_p3 }
  0x1f   : > { %1167 = shalt.err (!%p1164_p7)
}
  0x20   : > { %s1168_s9 = scalar_lea.vmem %s154_s26, 2048  ;;  %p1176_p1 = scmp.lt.s32.totalorder %s154_s26, %s154_s26 }
  0x21   : > { %p1169_p9 = scmp.ne.s32.totalorder %s154_s26, %s1168_s9  ;;  %p1177_p4 = scmp.lt.s32.totalorder %s1168_s9, %s1168_s9 }
  0x23   : > { %p1171_p10 = pnand %p1169_p9, %p1157_p13  ;;  %p1178_p8 = por %p1177_p4, %p1176_p1 }
  0x25   : > { %p1172_p6 = pneg %p1171_p10 }
  0x27   : > { %p1179_p2 = pnand %p1178_p8, %p1172_p6 }
  0x29   : > { %1182 = shalt.err (!%p1179_p2)
}
  0x2a   : > { %s1302_s10 = smov 128   ;;  %s1303_s11 = smov 8  }
  0x2b   : > { %1089 = dma.hbm_to_vmem [thread:$0]  (!%p1391_p11), %s1664_s1, 2048, %s154_s26, [#allocation7], %s1302_s10, %s1302_s10, %s1303_s11  }
  0x2c   : > { %p34_p1 = scmp.ge.s32.totalorder %s32_s28, 2  ;;  %s41_s25 = sadd.s32 1, %s1287_s14 }
  0x2d   : > { %p48_p2 = scmp.ne.s32.totalorder %s1287_s14, %s1283_s13  ;;  %p49_p4 = scmp.eq.s32.totalorder %s1299_s17, 0 }
  0x2e   : > { %s1692_s28 = smov (%p34_p1, %s32_s28), 0  ;;  %p1678_p8 = scmp.ne.s32.totalorder %s1672_s21, 0 }
  0x2f   : > { %p1421_p6 = por %p49_p4, %p48_p2  ;;  %s36_s30 = ssub.s32 %s1295_s16, %s1692_s28 }
  0x30   : > { %p1427_p10 = por %p1678_p8, %p48_p2  ;;  %p1099_p12 = scmp.lt.s32.totalorder %s1299_s17, 2 }
  0x31   : > { %p39_p11 = scmp.eq.s32.totalorder %s36_s30, 0  ;;  %s170_s26 = sand.u32 1, %s1287_s14  }
  0x32   : > { %s887_s4 = sshll.u32 %s170_s26, 8  ;;  %s900_s6 = sshll.u32 %s1295_s16, 12 }
  0x33   : > { %s1436_s5 = scalar_select %p39_p11, %s1287_s14, %s41_s25  }
  0x34   : > { %s1442_s9 = scalar_lea.hbm %s1663_s0, %s900_s6  ;;  %s174_s21 = scalar_lea.vmem [#allocation3], %s887_s4 }
  0x35   : > { %s182_s18 = sshll.u32 %s174_s21, 4  ;;  %p1448_p13 = pnand %p1099_p12, %p1421_p6  ;;  %s1444_s18 = int_to_ptr.vmem [resolvable:$true] %s182_s18 }
  0x36   : > { %s1452_s25 = scalar_lea.sflag [#allocation4], %s170_s26  ;;  %s1183_s30 = scalar_lea.hbm %s1442_s9, 4096 }
  0x37   : > { %p1184_p0 = scmp.ne.s32.totalorder %s1442_s9, %s1183_s30  ;;  %p1185_p3 = pneg %p1448_p13 }
  0x38   : > { %s1188_s29 = scalar_lea.hbm %s1663_s0, 8192  ;;  %p1189_p9 = scmp.lt.u32.totalorder %s1442_s9, %s1663_s0 }
  0x39   : > { %p1186_p5 = pnand %p1185_p3, %p1184_p0  ;;  %p1190_p1 = scmp.lt.u32.totalorder %s1188_s29, %s1183_s30 }
  0x3a   : > { %p1192_p4 = scmp.lt.u32.totalorder %s1183_s30, %s1442_s9 }
  0x3b   : > { %p1187_p7 = pneg %p1186_p5  ;;  %p1191_p2 = por %p1190_p1, %p1189_p9 }
  0x3d   : > { %p1193_p6 = por %p1192_p4, %p1191_p2 }
  0x3f   : > { %p1194_p8 = pnand %p1193_p6, %p1187_p7 }
  0x41   : > { %1197 = shalt.err (!%p1194_p8)
}
  0x42   : > { %s1198_s26 = scalar_lea.vmem %s1444_s18, 4096  ;;  %s1304_s21 = smov [#allocation3]  }
  0x43   : > { %p1199_p12 = scmp.ne.s32.totalorder %s1444_s18, %s1198_s26  ;;  %s1203_s4 = sshll.u32 %s1304_s21, 4  ;;  %s1204_s4 = int_to_ptr.vmem [resolvable:$false] %s1203_s4 }
  0x44   : > { %s1205_s6 = scalar_lea.vmem %s1204_s4, 8192  ;;  %p1206_p5 = scmp.lt.s32.totalorder %s1444_s18, %s1204_s4 }
  0x45   : > { %p1201_p11 = pnand %p1199_p12, %p1185_p3  ;;  %p1207_p9 = scmp.lt.s32.totalorder %s1205_s6, %s1198_s26 }
  0x47   : > { %p1202_p0 = pneg %p1201_p11  ;;  %p1208_p1 = por %p1207_p9, %p1206_p5 }
  0x49   : > { %p1209_p2 = pnand %p1208_p1, %p1202_p0 }
  0x4b   : > { %1212 = shalt.err (!%p1209_p2)
}
  0x4c   : > { %1093 = dma.hbm_to_vmem [thread:$0]  (!%p1448_p13), %s1442_s9, 4096, %s1444_s18, %s1452_s25, %s1302_s10, %s1302_s10, %s1303_s11  }
  0x4d   : > { %p1681_p3 = scmp.ne.s32.totalorder %s1675_s24, 0 }
  0x4e   : > { %s1486_s30 = sand.u32 (!%p1681_p3), 1, %s1283_s13   ;;  %p1682_p7 = scmp.ne.s32.totalorder (!%p1681_p3), %s1673_s22, 0 }
  0x4f   : > { %194 = sbr.rel (%p1681_p3) target bundleno = 385 (0x181), region = 32  ;;  %s891_s29 = sshll.u32 (!%p1681_p3), %s1486_s30, 8 }
  0x50   : > { %s197_s7 = scalar_lea.sflag (!%p1681_p3), [#allocation4], %s1486_s30  ;;  %s1492_s19 = scalar_lea.vmem (!%p1681_p3), [#allocation3], %s891_s29 }
  0x56   : > { %1266 = dma.done.wait (%p1682_p7), %s197_s7, 4096  }
  0x57   : > { %1268 = vsyncadd (%p1682_p7), %s197_s7, 4294963200  ;;  %p1683_p13 = scmp.ne.s32.totalorder %s1671_s20, 0 }
  0x59   : > { %1270 = dma.done.wait (%p1683_p13), [#allocation7], 2048  }
  0x5a   : > { %1272 = vsyncadd (%p1683_p13), [#allocation7], 4294965248  ;;  %v330_v0 = vld [vmem:[#allocation6] sm:$0xff]  ;;  %v331_v1 = vld [vmem:[#allocation6 + $0x8] sm:$0xff]  ;;  %s1545_s24 = scalar_lea.vmem [#allocation8], %s891_s29  ;;  %s901_s10 = sshll.u32 %s1291_s15, 12 }
  0x5b   : > { %v332_v2 = vld [vmem:[#allocation6 + $0x10] sm:$0xff]  ;;  %v1030_v3 = vpack.c.bf16 %v331_v1, %v330_v0  ;;  %v333_v4 = vld [vmem:[#allocation6 + $0x18] sm:$0xff]  ;;  %v334_v6 = vld [vmem:[#allocation6 + $0x20] sm:$0xff]  ;;  %s787_s11 = sshll.u32 %s1545_s24, 4  ;;  %s1608_s18 = scalar_lea.hbm %s1666_s3, %s901_s10  ;;  %s1610_s11 = int_to_ptr.vmem [resolvable:$true] %s787_s11 }
  0x5c   : > { %v1034_v5 = vpack.c.bf16 %v333_v4, %v332_v2  ;;  %v335_v7 = vld [vmem:[#allocation6 + $0x28] sm:$0xff]  ;;  %v298_v9 = vld [vmem:[%s1492_s19] sm:$0xff]  ;;  %v336_v11 = vld [vmem:[#allocation6 + $0x30] sm:$0xff]  ;;  %s774_s25 = scalar_lea.sflag [#allocation5], %s1486_s30  ;;  %s1213_s8 = scalar_lea.vmem %s1610_s11, 4096 }
  0x5d   : > { %1031 = vmatprep.subr.bf16.mxu0 %v1030_v3  ;;  %1062 = vmatprep.subr.bf16.mxu1 %v1030_v3  ;;  %v1038_v8 = vpack.c.bf16 %v335_v7, %v334_v6  ;;  %v314_v10 = vld [vmem:[%s1492_s19 + $0x80] sm:$0xff]  ;;  %v337_v12 = vld [vmem:[#allocation6 + $0x38] sm:$0xff]  ;;  %v339_v15 = vld [vmem:[#allocation6 + $0x48] sm:$0xff]  ;;  %p1214_p4 = scmp.ne.s32.totalorder %s1610_s11, %s1213_s8  ;;  %s1305_s26 = smov [#allocation8]  }
  0x5e   : > { %1033 = vmatpush3.bf16.msra.mxu0 %v1030_v3  ;;  %1070 = vmatpush3.bf16.msra.mxu1 %v1030_v3  ;;  %v1042_v13 = vpack.c.bf16 %v337_v12, %v336_v11  ;;  %v338_v14 = vld [vmem:[#allocation6 + $0x40] sm:$0xff]  ;;  %v340_v17 = vld [vmem:[#allocation6 + $0x50] sm:$0xff]  ;;  %v341_v18 = vld [vmem:[#allocation6 + $0x58] sm:$0xff]  ;;  %s1217_s21 = sshll.u32 %s1305_s26, 4  ;;  %s1218_s21 = int_to_ptr.vmem [resolvable:$false] %s1217_s21 }
  0x5f   : > { %1035 = vmatprep.subr.bf16.mxu0 %v1034_v5  ;;  %1063 = vmatprep.subr.bf16.mxu1 %v1034_v5  ;;  %v1046_v16 = vpack.c.bf16 %v339_v15, %v338_v14  ;;  %v1050_v19 = vpack.c.bf16 %v341_v18, %v340_v17  ;;  %v342_v20 = vld [vmem:[#allocation6 + $0x60] sm:$0xff]  ;;  %v343_v21 = vld [vmem:[#allocation6 + $0x68] sm:$0xff]  ;;  %v344_v23 = vld [vmem:[#allocation6 + $0x70] sm:$0xff]  ;;  %p1215_p6 = pnand %p1214_p4, %p1427_p10  ;;  %s1219_s4 = scalar_lea.vmem %s1218_s21, 8192 }
  0x60   : > { %982 = vmatprep.mubr.f32.mxu0 %v298_v9  ;;  %1006 = vmatprep.mubr.f32.mxu1 %v314_v10  ;;  %v1054_v22 = vpack.c.bf16 %v343_v21, %v342_v20  ;;  %v345_v24 = vld [vmem:[#allocation6 + $0x78] sm:$0xff]  ;;  %v299_v26 = vld [vmem:[%s1492_s19 + $0x8] sm:$0xff]  ;;  %v300_v28 = vld [vmem:[%s1492_s19 + $0x10] sm:$0xff]  ;;  %p1220_p12 = scmp.lt.s32.totalorder %s1610_s11, %s1218_s21  ;;  %p1221_p11 = scmp.lt.s32.totalorder %s1219_s4, %s1213_s8 }
  0x61   : > { %v1058_v25 = vpack.c.bf16 %v345_v24, %v344_v23  ;;  %v315_v27 = vld [vmem:[%s1492_s19 + $0x88] sm:$0xff]  ;;  %v316_v29 = vld [vmem:[%s1492_s19 + $0x90] sm:$0xff]  ;;  %v301_v30 = vld [vmem:[%s1492_s19 + $0x18] sm:$0xff]  ;;  %p1216_p8 = pneg %p1215_p6 }
  0x62   : > { %1037 = vmatpush3.bf16.msra.mxu0 %v1034_v5  ;;  %1071 = vmatpush3.bf16.msra.mxu1 %v1034_v5  ;;  %v317_v31 = vld [vmem:[%s1492_s19 + $0x98] sm:$0xff]  ;;  %v302_v32 = vld [vmem:[%s1492_s19 + $0x20] sm:$0xff]  ;;  %v303_v34 = vld [vmem:[%s1492_s19 + $0x28] sm:$0xff]  ;;  %p1222_p0 = por %p1221_p11, %p1220_p12 }
  0x63   : > { %1039 = vmatprep.subr.bf16.mxu0 %v1038_v8  ;;  %1064 = vmatprep.subr.bf16.mxu1 %v1038_v8  ;;  %v318_v33 = vld [vmem:[%s1492_s19 + $0xa0] sm:$0xff]  ;;  %v319_v35 = vld [vmem:[%s1492_s19 + $0xa8] sm:$0xff]  ;;  %v304_v36 = vld [vmem:[%s1492_s19 + $0x30] sm:$0xff] }
  0x64   : > { %v320_v37 = vld [vmem:[%s1492_s19 + $0xb0] sm:$0xff]  ;;  %v305_v38 = vld [vmem:[%s1492_s19 + $0x38] sm:$0xff]  ;;  %v306_v40 = vld [vmem:[%s1492_s19 + $0x40] sm:$0xff]  ;;  %p1223_p5 = pnand %p1222_p0, %p1216_p8 }
  0x65   : > { %v321_v39 = vld [vmem:[%s1492_s19 + $0xb8] sm:$0xff]  ;;  %v322_v41 = vld [vmem:[%s1492_s19 + $0xc0] sm:$0xff]  ;;  %v307_v42 = vld [vmem:[%s1492_s19 + $0x48] sm:$0xff] }
  0x66   : > { %1041 = vmatpush3.bf16.msra.mxu0 %v1038_v8  ;;  %1072 = vmatpush3.bf16.msra.mxu1 %v1038_v8  ;;  %v323_v43 = vld [vmem:[%s1492_s19 + $0xc8] sm:$0xff]  ;;  %v308_v44 = vld [vmem:[%s1492_s19 + $0x50] sm:$0xff]  ;;  %v309_v46 = vld [vmem:[%s1492_s19 + $0x58] sm:$0xff] }
  0x67   : > { %1043 = vmatprep.subr.bf16.mxu0 %v1042_v13  ;;  %1065 = vmatprep.subr.bf16.mxu1 %v1042_v13  ;;  %v324_v45 = vld [vmem:[%s1492_s19 + $0xd0] sm:$0xff]  ;;  %v325_v47 = vld [vmem:[%s1492_s19 + $0xd8] sm:$0xff]  ;;  %v310_v48 = vld [vmem:[%s1492_s19 + $0x60] sm:$0xff] }
  0x68   : > { %v326_v49 = vld [vmem:[%s1492_s19 + $0xe0] sm:$0xff]  ;;  %v311_v50 = vld [vmem:[%s1492_s19 + $0x68] sm:$0xff]  ;;  %v312_v52 = vld [vmem:[%s1492_s19 + $0x70] sm:$0xff] }
  0x69   : > { %v327_v51 = vld [vmem:[%s1492_s19 + $0xe8] sm:$0xff]  ;;  %v328_v53 = vld [vmem:[%s1492_s19 + $0xf0] sm:$0xff]  ;;  %v313_v54 = vld [vmem:[%s1492_s19 + $0x78] sm:$0xff] }
  0x6a   : > { %1045 = vmatpush3.bf16.msra.mxu0 %v1042_v13  ;;  %1073 = vmatpush3.bf16.msra.mxu1 %v1042_v13  ;;  %v329_v55 = vld [vmem:[%s1492_s19 + $0xf8] sm:$0xff]  ;;  %v1537_v56 = vld [vmem:[%s1665_s2] ss:$0 sm:$0xff] }
  0x6b   : > { %1047 = vmatprep.subr.bf16.mxu0 %v1046_v16  ;;  %1066 = vmatprep.subr.bf16.mxu1 %v1046_v16 }
  0x6e   : > { %1049 = vmatpush3.bf16.msra.mxu0 %v1046_v16  ;;  %1074 = vmatpush3.bf16.msra.mxu1 %v1046_v16 }
  0x6f   : > { %1051 = vmatprep.subr.bf16.mxu0 %v1050_v19  ;;  %1067 = vmatprep.subr.bf16.mxu1 %v1050_v19 }
  0x72   : > { %1053 = vmatpush3.bf16.msra.mxu0 %v1050_v19  ;;  %1075 = vmatpush3.bf16.msra.mxu1 %v1050_v19 }
  0x73   : > { %1055 = vmatprep.subr.bf16.mxu0 %v1054_v22  ;;  %1068 = vmatprep.subr.bf16.mxu1 %v1054_v22 }
  0x76   : > { %1057 = vmatpush3.bf16.msra.mxu0 %v1054_v22  ;;  %1076 = vmatpush3.bf16.msra.mxu1 %v1054_v22 }
  0x77   : > { %1059 = vmatprep.subr.bf16.mxu0 %v1058_v25  ;;  %1069 = vmatprep.subr.bf16.mxu1 %v1058_v25 }
  0x7a   : > { %1061 = vmatpush3.bf16.msra.mxu0 %v1058_v25  ;;  %1077 = vmatpush3.bf16.msra.mxu1 %v1058_v25 }
  0x7d   : > { %983 = vmatmul.mubr.f32.vlgmr.msra.gmra.mrb[0].mxu0 %v299_v26  ;;  %1007 = vmatmul.mubr.f32.vlgmr.msra.gmra.mrb[0].mxu1 %v315_v27 }
  0x7e   : > { %985 = vmatprep.mubr.f32.mxu0 %v300_v28  ;;  %1009 = vmatprep.mubr.f32.mxu1 %v316_v29 }
  0x81   : > { %986 = vmatmul.mubr.f32.gmra.mrb[2].mxu0 %v301_v30  ;;  %1010 = vmatmul.mubr.f32.gmra.mrb[2].mxu1 %v317_v31 }
  0x82   : > { %988 = vmatprep.mubr.f32.mxu0 %v302_v32  ;;  %1012 = vmatprep.mubr.f32.mxu1 %v318_v33 }
  0x85   : > { %989 = vmatmul.mubr.f32.gmra.mrb[4].mxu0 %v303_v34  ;;  %1013 = vmatmul.mubr.f32.gmra.mrb[4].mxu1 %v319_v35 }
  0x86   : > { %991 = vmatprep.mubr.f32.mxu0 %v304_v36  ;;  %1015 = vmatprep.mubr.f32.mxu1 %v320_v37 }
  0x89   : > { %992 = vmatmul.mubr.f32.gmra.mrb[6].mxu0 %v305_v38  ;;  %1016 = vmatmul.mubr.f32.gmra.mrb[6].mxu1 %v321_v39 }
  0x8a   : > { %994 = vmatprep.mubr.f32.mxu0 %v306_v40  ;;  %1018 = vmatprep.mubr.f32.mxu1 %v322_v41 }
  0x8d   : > { %995 = vmatmul.mubr.f32.gmra.mrb[8].mxu0 %v307_v42  ;;  %1019 = vmatmul.mubr.f32.gmra.mrb[8].mxu1 %v323_v43 }
  0x8e   : > { %997 = vmatprep.mubr.f32.mxu0 %v308_v44  ;;  %1021 = vmatprep.mubr.f32.mxu1 %v324_v45 }
  0x91   : > { %998 = vmatmul.mubr.f32.gmra.mrb[10].mxu0 %v309_v46  ;;  %1022 = vmatmul.mubr.f32.gmra.mrb[10].mxu1 %v325_v47 }
  0x92   : > { %1000 = vmatprep.mubr.f32.mxu0 %v310_v48  ;;  %1024 = vmatprep.mubr.f32.mxu1 %v326_v49 }
  0x95   : > { %1001 = vmatmul.mubr.f32.gmra.mrb[12].mxu0 %v311_v50  ;;  %1025 = vmatmul.mubr.f32.gmra.mrb[12].mxu1 %v327_v51 }
  0x96   : > { %1003 = vmatprep.mubr.f32.mxu0 %v312_v52  ;;  %1027 = vmatprep.mubr.f32.mxu1 %v328_v53 }
  0x99   : > { %1004 = vmatmul.mubr.f32.gmra.mrb[14].mxu0 %v313_v54  ;;  %1028 = vmatmul.mubr.f32.gmra.mrb[14].mxu1 %v329_v55 }
 0x150   : > { %v984_v57 = vpop.f32.mrb[0].mxu0  ;;  %v1008_v58 = vpop.f32.mrb[0].mxu1 }
 0x151   : > { %v678_v59 = vadd.f32 %v984_v57, %v1537_v56  ;;  %v694_v60 = vadd.f32 %v1008_v58, %v1537_v56  ;;  %v412_v61 = vpop.f32.mrb[1].mxu0  ;;  %v492_v62 = vpop.f32.mrb[1].mxu1 }
 0x152   : > { %v677_v63 = vadd.f32 %v1537_v56, %v412_v61  ;;  %v693_v0 = vadd.f32 %v1537_v56, %v492_v62 }
 0x153   : > { %v710_v1 = vmax.f32 %v678_v59, 0.0  ;;  %v726_v2 = vmax.f32 %v694_v60, 0.0 }
 0x154   : > { %v709_v3 = vmax.f32 %v677_v63, 0.0  ;;  %v725_v4 = vmax.f32 %v693_v0, 0.0  ;;  %v987_v5 = vpop.f32.mrb[2].mxu0  ;;  %v1011_v6 = vpop.f32.mrb[2].mxu1 }
 0x155   : > { %742 = vst [vmem:[%s1545_s24 + $0x8] sm:$0xff] %v710_v1  ;;  %758 = vst [vmem:[%s1545_s24 + $0x88] sm:$0xff] %v726_v2  ;;  %v680_v7 = vadd.f32 %v987_v5, %v1537_v56  ;;  %v696_v8 = vadd.f32 %v1011_v6, %v1537_v56  ;;  %v422_v9 = vpop.f32.mrb[3].mxu0  ;;  %v502_v10 = vpop.f32.mrb[3].mxu1 }
 0x156   : > { %741 = vst [vmem:[%s1545_s24] sm:$0xff] %v709_v3  ;;  %757 = vst [vmem:[%s1545_s24 + $0x80] sm:$0xff] %v725_v4  ;;  %v679_v11 = vadd.f32 %v1537_v56, %v422_v9  ;;  %v695_v12 = vadd.f32 %v1537_v56, %v502_v10 }
 0x157   : > { %v712_v13 = vmax.f32 %v680_v7, 0.0  ;;  %v728_v14 = vmax.f32 %v696_v8, 0.0 }
 0x158   : > { %v711_v15 = vmax.f32 %v679_v11, 0.0  ;;  %v727_v16 = vmax.f32 %v695_v12, 0.0  ;;  %v990_v17 = vpop.f32.mrb[4].mxu0  ;;  %v1014_v18 = vpop.f32.mrb[4].mxu1 }
 0x159   : > { %744 = vst [vmem:[%s1545_s24 + $0x18] sm:$0xff] %v712_v13  ;;  %760 = vst [vmem:[%s1545_s24 + $0x98] sm:$0xff] %v728_v14  ;;  %v682_v19 = vadd.f32 %v990_v17, %v1537_v56  ;;  %v698_v20 = vadd.f32 %v1014_v18, %v1537_v56  ;;  %v432_v21 = vpop.f32.mrb[5].mxu0  ;;  %v512_v22 = vpop.f32.mrb[5].mxu1 }
 0x15a   : > { %743 = vst [vmem:[%s1545_s24 + $0x10] sm:$0xff] %v711_v15  ;;  %759 = vst [vmem:[%s1545_s24 + $0x90] sm:$0xff] %v727_v16  ;;  %v681_v23 = vadd.f32 %v1537_v56, %v432_v21  ;;  %v697_v24 = vadd.f32 %v1537_v56, %v512_v22 }
 0x15b   : > { %v714_v25 = vmax.f32 %v682_v19, 0.0  ;;  %v730_v26 = vmax.f32 %v698_v20, 0.0 }
 0x15c   : > { %v713_v27 = vmax.f32 %v681_v23, 0.0  ;;  %v729_v28 = vmax.f32 %v697_v24, 0.0  ;;  %v993_v29 = vpop.f32.mrb[6].mxu0  ;;  %v1017_v30 = vpop.f32.mrb[6].mxu1 }
 0x15d   : > { %746 = vst [vmem:[%s1545_s24 + $0x28] sm:$0xff] %v714_v25  ;;  %762 = vst [vmem:[%s1545_s24 + $0xa8] sm:$0xff] %v730_v26  ;;  %v684_v31 = vadd.f32 %v993_v29, %v1537_v56  ;;  %v700_v32 = vadd.f32 %v1017_v30, %v1537_v56  ;;  %v442_v33 = vpop.f32.mrb[7].mxu0  ;;  %v522_v34 = vpop.f32.mrb[7].mxu1 }
 0x15e   : > { %745 = vst [vmem:[%s1545_s24 + $0x20] sm:$0xff] %v713_v27  ;;  %761 = vst [vmem:[%s1545_s24 + $0xa0] sm:$0xff] %v729_v28  ;;  %v683_v35 = vadd.f32 %v1537_v56, %v442_v33  ;;  %v699_v36 = vadd.f32 %v1537_v56, %v522_v34 }
 0x15f   : > { %v716_v37 = vmax.f32 %v684_v31, 0.0  ;;  %v732_v38 = vmax.f32 %v700_v32, 0.0 }
 0x160   : > { %v715_v39 = vmax.f32 %v683_v35, 0.0  ;;  %v731_v40 = vmax.f32 %v699_v36, 0.0  ;;  %v996_v41 = vpop.f32.mrb[8].mxu0  ;;  %v1020_v42 = vpop.f32.mrb[8].mxu1 }
 0x161   : > { %748 = vst [vmem:[%s1545_s24 + $0x38] sm:$0xff] %v716_v37  ;;  %764 = vst [vmem:[%s1545_s24 + $0xb8] sm:$0xff] %v732_v38  ;;  %v686_v43 = vadd.f32 %v996_v41, %v1537_v56  ;;  %v702_v44 = vadd.f32 %v1020_v42, %v1537_v56  ;;  %v452_v45 = vpop.f32.mrb[9].mxu0  ;;  %v532_v46 = vpop.f32.mrb[9].mxu1 }
 0x162   : > { %747 = vst [vmem:[%s1545_s24 + $0x30] sm:$0xff] %v715_v39  ;;  %763 = vst [vmem:[%s1545_s24 + $0xb0] sm:$0xff] %v731_v40  ;;  %v685_v47 = vadd.f32 %v1537_v56, %v452_v45  ;;  %v701_v48 = vadd.f32 %v1537_v56, %v532_v46 }
 0x163   : > { %v718_v49 = vmax.f32 %v686_v43, 0.0  ;;  %v734_v50 = vmax.f32 %v702_v44, 0.0 }
 0x164   : > { %v717_v51 = vmax.f32 %v685_v47, 0.0  ;;  %v733_v52 = vmax.f32 %v701_v48, 0.0  ;;  %v999_v53 = vpop.f32.mrb[10].mxu0  ;;  %v1023_v54 = vpop.f32.mrb[10].mxu1 }
 0x165   : > { %750 = vst [vmem:[%s1545_s24 + $0x48] sm:$0xff] %v718_v49  ;;  %766 = vst [vmem:[%s1545_s24 + $0xc8] sm:$0xff] %v734_v50  ;;  %v688_v55 = vadd.f32 %v999_v53, %v1537_v56  ;;  %v704_v57 = vadd.f32 %v1023_v54, %v1537_v56  ;;  %v462_v58 = vpop.f32.mrb[11].mxu0  ;;  %v542_v59 = vpop.f32.mrb[11].mxu1 }
 0x166   : > { %749 = vst [vmem:[%s1545_s24 + $0x40] sm:$0xff] %v717_v51  ;;  %765 = vst [vmem:[%s1545_s24 + $0xc0] sm:$0xff] %v733_v52  ;;  %v687_v60 = vadd.f32 %v1537_v56, %v462_v58  ;;  %v703_v61 = vadd.f32 %v1537_v56, %v542_v59 }
 0x167   : > { %v720_v62 = vmax.f32 %v688_v55, 0.0  ;;  %v736_v63 = vmax.f32 %v704_v57, 0.0 }
 0x168   : > { %v719_v0 = vmax.f32 %v687_v60, 0.0  ;;  %v735_v1 = vmax.f32 %v703_v61, 0.0  ;;  %v1002_v2 = vpop.f32.mrb[12].mxu0  ;;  %v1026_v3 = vpop.f32.mrb[12].mxu1 }
 0x169   : > { %752 = vst [vmem:[%s1545_s24 + $0x58] sm:$0xff] %v720_v62  ;;  %768 = vst [vmem:[%s1545_s24 + $0xd8] sm:$0xff] %v736_v63  ;;  %v690_v4 = vadd.f32 %v1002_v2, %v1537_v56  ;;  %v706_v5 = vadd.f32 %v1026_v3, %v1537_v56  ;;  %v472_v6 = vpop.f32.mrb[13].mxu0  ;;  %v552_v7 = vpop.f32.mrb[13].mxu1 }
 0x16a   : > { %751 = vst [vmem:[%s1545_s24 + $0x50] sm:$0xff] %v719_v0  ;;  %767 = vst [vmem:[%s1545_s24 + $0xd0] sm:$0xff] %v735_v1  ;;  %v689_v8 = vadd.f32 %v1537_v56, %v472_v6  ;;  %v705_v9 = vadd.f32 %v1537_v56, %v552_v7 }
 0x16b   : > { %v722_v10 = vmax.f32 %v690_v4, 0.0  ;;  %v738_v11 = vmax.f32 %v706_v5, 0.0 }
 0x16c   : > { %v721_v12 = vmax.f32 %v689_v8, 0.0  ;;  %v737_v13 = vmax.f32 %v705_v9, 0.0  ;;  %v1005_v14 = vpop.f32.mrb[14].mxu0  ;;  %v1029_v15 = vpop.f32.mrb[14].mxu1 }
 0x16d   : > { %754 = vst [vmem:[%s1545_s24 + $0x68] sm:$0xff] %v722_v10  ;;  %770 = vst [vmem:[%s1545_s24 + $0xe8] sm:$0xff] %v738_v11  ;;  %v692_v16 = vadd.f32 %v1005_v14, %v1537_v56  ;;  %v708_v17 = vadd.f32 %v1029_v15, %v1537_v56  ;;  %v482_v18 = vpop.f32.mrb[15].mxu0  ;;  %v562_v19 = vpop.f32.mrb[15].mxu1 }
 0x16e   : > { %753 = vst [vmem:[%s1545_s24 + $0x60] sm:$0xff] %v721_v12  ;;  %769 = vst [vmem:[%s1545_s24 + $0xe0] sm:$0xff] %v737_v13  ;;  %v691_v20 = vadd.f32 %v1537_v56, %v482_v18  ;;  %v707_v21 = vadd.f32 %v1537_v56, %v562_v19 }
 0x16f   : > { %v724_v22 = vmax.f32 %v692_v16, 0.0  ;;  %v740_v23 = vmax.f32 %v708_v17, 0.0 }
 0x170   : > { %v723_v24 = vmax.f32 %v691_v20, 0.0  ;;  %v739_v25 = vmax.f32 %v707_v21, 0.0 }
 0x171   : > { %756 = vst [vmem:[%s1545_s24 + $0x78] sm:$0xff] %v724_v22  ;;  %772 = vst [vmem:[%s1545_s24 + $0xf8] sm:$0xff] %v740_v23 }
 0x172   : > { %755 = vst [vmem:[%s1545_s24 + $0x70] sm:$0xff] %v723_v24  ;;  %771 = vst [vmem:[%s1545_s24 + $0xf0] sm:$0xff] %v739_v25 }
 0x173   : > { %1226 = shalt.err (!%p1223_p5)
}
 0x174   : > { %s1227_s6 = scalar_lea.hbm %s1608_s18, 4096  ;;  %s1231_s19 = scalar_lea.hbm %s1666_s3, 8192 }
 0x175   : > { %p1228_p9 = scmp.ne.s32.totalorder %s1608_s18, %s1227_s6  ;;  %p1232_p3 = scmp.lt.u32.totalorder %s1608_s18, %s1666_s3 }
 0x176   : > { %p1233_p7 = scmp.lt.u32.totalorder %s1231_s19, %s1227_s6  ;;  %p1235_p4 = scmp.lt.u32.totalorder %s1227_s6, %s1608_s18 }
 0x177   : > { %p1229_p1 = pnand %p1228_p9, %p1427_p10 }
 0x178   : > { %p1234_p13 = por %p1233_p7, %p1232_p3 }
 0x179   : > { %p1230_p2 = pneg %p1229_p1 }
 0x17a   : > { %p1236_p6 = por %p1235_p4, %p1234_p13 }
 0x17c   : > { %p1237_p8 = pnand %p1236_p6, %p1230_p2 }
 0x17e   : > { %1240 = shalt.err (!%p1237_p8)
}
 0x17f   : > { %s1306_s24 = smov 128   ;;  %s1307_s10 = smov 8  }
 0x180   : > { %1084 = dma.vmem_to_hbm [thread:$0]  (%p1427_p10), %s1610_s11, 4096, %s1608_s18, %s774_s25, %s1306_s24, %s1306_s24, %s1307_s10  }
 0x181 PF: > { %s802_s15 = sand.u32 1, %s1279_s12   ;;  %p1684_p12 = scmp.ne.s32.totalorder %s1674_s23, 0 }
 0x182   : > { %p1685_p11 = scmp.ge.s32.totalorder %s1299_s17, 2  ;;  %s803_s9 = scalar_lea.sflag [#allocation5], %s802_s15 }
 0x184   : > { %p1095_p0 = pnand %p1685_p11, %p1684_p12 }
 0x186   : > { %1274 = dma.done.wait (!%p1095_p0), %s803_s9, 4096  }
 0x187   : > { %1276 = vsyncadd (!%p1095_p0), %s803_s9, 4294963200  ;;  %s20_s17 = sadd.s32 1, %s1299_s17   ;;  %s1686_s12 = smov %s1283_s13 }
 0x188   : > { %p17_p5 = scmp.ge.s32.totalorder %s20_s17, 4   ;;  %s1687_s13 = smov %s1287_s14 }
 0x189   : > { %s1688_s14 = smov %s1436_s5  ;;  %s1689_s15 = smov %s1295_s16 }
 0x18a   : > { %s1690_s16 = smov %s1692_s28  ;;  %19 = sbr.rel (!%p17_p5) target bundleno = 7 (0x7), region = 90 }
 0x191   :  { %808 = vsyncpa [#allocation4], 1 }
 0x192   :  { %810 = vsyncpa [#allocation4 + $0x1], 1 }
 0x193   :  { %811 = vsyncpa [#allocation7], 1 }
 0x194   :  { %812 = vsyncpa [#allocation5], 1 }
 0x195   :  { %814 = vsyncpa [#allocation5 + $0x1], 1 }

</bundles_post_ra>
